<compile_context>
chip_gen: v7x
topology: tpu7x:2x2x1
jax: 0.10.0
libtpu: 0.0.40
codegen_flags: <defaults>
</compile_context>

<pallas_src>
import functools
import re

import jax
import jax.numpy as jnp
from jax.experimental import pallas as pl
from jax.experimental.pallas import tpu as pltpu


def _round_up(x, m):
    return (x + m - 1) // m * m


def _tpu_generation():
    try:
        kind = jax.devices()[0].device_kind.lower()
    except Exception:
        return 0
    m = re.search(r"(\d+)", kind)
    return int(m.group(1)) if m else 0


# ---------------------------------------------------------------------------
# Fast path kernel: whole problem resident in VMEM.
#   p_ref : (R, Kp)   im2col patch rows
#   w_ref : (Kp, C)   weight matrix (zero-padded lanes)
#   b_ref : (1, C)    conv bias
#   g_ref : (1, C)    BN gamma (zero in padded lanes)
#   be_ref: (1, C)    BN beta  (zero in padded lanes)
#   o_ref : (R, C)    final normalized output
# ---------------------------------------------------------------------------
def _fused_small_kernel(p_ref, w_ref, b_ref, g_ref, be_ref, o_ref, *, inv_r, eps):
    y = jnp.dot(p_ref[...], w_ref[...], preferred_element_type=jnp.float32)
    y = jnp.maximum(y + b_ref[...], 0.0)                     # bias + ReLU
    s = jnp.sum(y, axis=0, keepdims=True)
    q = jnp.sum(y * y, axis=0, keepdims=True)
    mean = s * inv_r
    var = jnp.maximum(q * inv_r - mean * mean, 0.0)
    scale = g_ref[...] * jax.lax.rsqrt(var + eps)
    shift = be_ref[...] - mean * scale
    o_ref[...] = y * scale + shift


# ---------------------------------------------------------------------------
# Streamed kernel: conv-as-matmul + bias + ReLU + per-split partial stats.
#   p_ref : (tm, Keff)       lane-folded patch tile
#   w_ref : (Keff, Lw)       block-diagonal weight (Lw = 128-multiple, no dead lanes)
#   b_ref : (1, Lw)          tiled bias
#   y_ref : (tm, Lw)         relu(conv) output tile (lane-dense)
#   s_ref : (1, 1, Lw)       per-split partial sum (resident across axis 1)
#   q_ref : (1, 1, Lw)       per-split partial sum of squares
# ---------------------------------------------------------------------------
def _conv_relu_stats_kernel(p_ref, w_ref, b_ref, y_ref, s_ref, q_ref):
    j = pl.program_id(1)

    y = jnp.dot(p_ref[...], w_ref[...], preferred_element_type=jnp.float32)
    y = jnp.maximum(y + b_ref[...], 0.0)
    y_ref[...] = y

    @pl.when(j == 0)
    def _():
        s_ref[...] = jnp.zeros_like(s_ref)
        q_ref[...] = jnp.zeros_like(q_ref)

    s_ref[...] += jnp.sum(y, axis=0, keepdims=True)[None]
    q_ref[...] += jnp.sum(y * y, axis=0, keepdims=True)[None]


def _im2col(x_nchw, kh=3, kw=3, pad=1):
    """(N, Cin, H, W) -> (N*H*W, Cin*kh*kw); feature order (Cin, kh, kw)."""
    n, cin, h, w = x_nchw.shape
    patches = jax.lax.conv_general_dilated_patches(
        x_nchw, filter_shape=(kh, kw), window_strides=(1, 1),
        padding=((pad, pad), (pad, pad)),
        dimension_numbers=("NCHW", "OIHW", "NCHW"))
    return patches.transpose(0, 2, 3, 1).reshape(n * h * w, cin * kh * kw)


@functools.partial(jax.jit, static_argnames=("eps", "num_splits", "vmem_limit",
                                             "tile_budget", "force_streamed"))
def _forward(x, weight, bias, gamma, beta, *, eps, num_splits, vmem_limit,
             tile_budget, force_streamed=False):
    n, cin, h, w = x.shape
    cout, _, kh, kw = weight.shape
    r = n * h * w
    k = cin * kh * kw
    k_pad = _round_up(k, 8)

    patches = _im2col(x, kh, kw, pad=1)                                # (r, k)
    patches = jnp.pad(patches, ((0, 0), (0, k_pad - k)))               # (r, k_pad)

    w_mat = jnp.zeros((k_pad, cout), jnp.float32).at[:k, :].set(
        weight.reshape(cout, k).T)

    # ---------------- fast path: everything resident in VMEM ----------------
    lane1 = _round_up(cout, 128)
    fast_bytes = 8 * r * (_round_up(k_pad, 128) + lane1) + 4 * k_pad * lane1
    if (not force_streamed) and fast_bytes <= min(tile_budget, 24 * 1024 * 1024):
        wp = jnp.zeros((k_pad, lane1), jnp.float32).at[:, :cout].set(w_mat)
        bp = jnp.zeros((1, lane1), jnp.float32).at[:, :cout].set(bias[None, :])
        gp = jnp.zeros((1, lane1), jnp.float32).at[:, :cout].set(gamma[None, :])
        bep = jnp.zeros((1, lane1), jnp.float32).at[:, :cout].set(beta[None, :])

        out = pl.pallas_call(
            functools.partial(_fused_small_kernel, inv_r=1.0 / r, eps=eps),
            out_shape=jax.ShapeDtypeStruct((r, lane1), jnp.float32),
            grid_spec=pltpu.PrefetchScalarGridSpec(
                num_scalar_prefetch=0,
                grid=(1,),
                in_specs=[
                    pl.BlockSpec((r, k_pad), lambda i: (0, 0)),
                    pl.BlockSpec((k_pad, lane1), lambda i: (0, 0)),
                    pl.BlockSpec((1, lane1), lambda i: (0, 0)),
                    pl.BlockSpec((1, lane1), lambda i: (0, 0)),
                    pl.BlockSpec((1, lane1), lambda i: (0, 0)),
                ],
                out_specs=pl.BlockSpec((r, lane1), lambda i: (0, 0)),
            ),
            compiler_params=pltpu.CompilerParams(
                dimension_semantics=("arbitrary",),
                vmem_limit_bytes=vmem_limit,
            ),
        )(patches, wp, bp, gp, bep)
        out = out[:, :cout]
        # NCHW for parity with the PyTorch module (NHWC return would save a pass).
        return out.reshape(n, h, w, cout).transpose(0, 3, 1, 2)

    # ---------------- streamed path: lane-folded, tiled over rows -----------
    if cout <= 128 and 128 % cout == 0:
        fold = 128 // cout                      # pack `fold` rows per 128-wide lane row
    else:
        fold = 1
    lane_w = cout * fold if fold > 1 else _round_up(cout, 128)
    k_eff = fold * k_pad
    r_fold = -(-r // fold)

    # Adaptive row tile from VMEM budget; count the lane-padded patch footprint.
    per_row_bytes = 8 * (_round_up(k_eff, 128) + lane_w)     # f32, double-buffered
    tm_f = max(256, tile_budget // per_row_bytes)
    tm_f = min(tm_f, 8192)
    tm_f = min(tm_f, _round_up(-(-r_fold // num_splits), 8))
    tm_f = _round_up(tm_f, 8)

    r_fold_pad = _round_up(r_fold, num_splits * tm_f)
    t_steps = r_fold_pad // (num_splits * tm_f)
    r_pad = r_fold_pad * fold

    patches = jnp.pad(patches, ((0, r_pad - r), (0, 0))).reshape(r_fold_pad, k_eff)

    w_big = jnp.zeros((k_eff, lane_w), jnp.float32)
    b_big = jnp.zeros((1, lane_w), jnp.float32)
    for f in range(fold):
        w_big = w_big.at[f * k_pad:(f + 1) * k_pad, f * cout:(f + 1) * cout].set(w_mat)
        b_big = b_big.at[:, f * cout:(f + 1) * cout].set(bias[None, :])

    y, s_parts, q_parts = pl.pallas_call(
        _conv_relu_stats_kernel,
        out_shape=(
            jax.ShapeDtypeStruct((r_fold_pad, lane_w), jnp.float32),
            jax.ShapeDtypeStruct((num_splits, 1, lane_w), jnp.float32),
            jax.ShapeDtypeStruct((num_splits, 1, lane_w), jnp.float32),
        ),
        grid_spec=pltpu.PrefetchScalarGridSpec(
            num_scalar_prefetch=0,
            grid=(num_splits, t_steps),
            in_specs=[
                pl.BlockSpec((tm_f, k_eff), lambda i, j: (i * t_steps + j, 0)),
                pl.BlockSpec((k_eff, lane_w), lambda i, j: (0, 0)),
                pl.BlockSpec((1, lane_w), lambda i, j: (0, 0)),
            ],
            out_specs=[
                pl.BlockSpec((tm_f, lane_w), lambda i, j: (i * t_steps + j, 0)),
                pl.BlockSpec((1, 1, lane_w), lambda i, j: (i, 0, 0)),
                pl.BlockSpec((1, 1, lane_w), lambda i, j: (i, 0, 0)),
            ],
        ),
        compiler_params=pltpu.CompilerParams(
            dimension_semantics=("parallel", "arbitrary"),
            vmem_limit_bytes=vmem_limit,
        ),
    )(patches, w_big, b_big)

    # ---- BatchNorm batch statistics (training forward, biased variance) ----
    # Padded (zero) im2col rows produce exactly relu(bias) per channel; subtract.
    n_pad_rows = r_pad - r
    relu_b = jnp.maximum(bias, 0.0)
    s128 = s_parts.sum(axis=(0, 1))
    q128 = q_parts.sum(axis=(0, 1))
    if fold > 1:
        s_c = s128.reshape(fold, cout).sum(axis=0)
        q_c = q128.reshape(fold, cout).sum(axis=0)
    else:
        s_c = s128[:cout]
        q_c = q128[:cout]
    s_c = s_c - n_pad_rows * relu_b
    q_c = q_c - n_pad_rows * relu_b * relu_b
    mean = s_c / r
    var = jnp.maximum(q_c / r - mean * mean, 0.0)
    scale = gamma / jnp.sqrt(var + eps)
    shift = beta - mean * scale

    # ---- BN apply, fused by XLA with the un-fold + NHWC->NCHW transpose ----
    if fold > 1:
        y_flat = y.reshape(r_pad, cout)[:r]
    else:
        y_flat = y[:r, :cout]
    out = y_flat * scale[None, :] + shift[None, :]
    return out.reshape(n, h, w, cout).transpose(0, 3, 1, 2)


def cnn_relu_batchnorm(x, weight, bias, gamma, beta, *, eps=1e-3):
    """Forward pass of CNN_ReLU_BatchNorm (training-mode batch statistics).

    x: (N, Cin, H, W) f32; weight: (Cout, Cin, 3, 3); bias/gamma/beta: (Cout,)
    returns (N, Cout, H, W) f32.  eps=1e-3 matches nn.BatchNorm2d(eps=0.001).
    """
    gen = _tpu_generation()
    if gen >= 7:            # v7x: 64 MiB VMEM, 2 TensorCores
        vmem_limit, tile_budget, num_splits = 48 << 20, 28 << 20, 2
    elif gen in (5, 6):     # v5e/v6e: 128 MiB VMEM, 1 TensorCore
        vmem_limit, tile_budget, num_splits = 96 << 20, 56 << 20, 1
    else:                   # unknown: conservative
        vmem_limit, tile_budget, num_splits = 32 << 20, 20 << 20, 1
    return _forward(x, weight, bias, gamma, beta, eps=eps,
                    num_splits=num_splits, vmem_limit=vmem_limit,
                    tile_budget=tile_budget)


def _reference(x, weight, bias, gamma, beta, eps=1e-3):
    y = jax.lax.conv_general_dilated(
        x, weight, window_strides=(1, 1), padding=((1, 1), (1, 1)),
        dimension_numbers=("NCHW", "OIHW", "NCHW"))
    y = y + bias[None, :, None, None]
    y = jnp.maximum(y, 0.0)
    mean = y.mean(axis=(0, 2, 3))
    var = ((y - mean[None, :, None, None]) ** 2).mean(axis=(0, 2, 3))
    yhat = (y - mean[None, :, None, None]) / jnp.sqrt(var[None, :, None, None] + eps)
    return yhat * gamma[None, :, None, None] + beta[None, :, None, None]


if __name__ == "__main__":
    key = jax.random.PRNGKey(0)
    k_x, k_w, k_b, k_g, k_be = jax.random.split(key, 5)

    N, CIN, H, W = 2, 1, 16, 16
    COUT, KS = 64, 3

    x = jax.random.normal(k_x, (N, CIN, H, W), dtype=jnp.float32)
    weight = jax.random.normal(k_w, (COUT, CIN, KS, KS), dtype=jnp.float32) * 0.1
    bias = jax.random.normal(k_b, (COUT,), dtype=jnp.float32) * 0.1
    gamma = 1.0 + 0.1 * jax.random.normal(k_g, (COUT,), dtype=jnp.float32)
    beta = 0.1 * jax.random.normal(k_be, (COUT,), dtype=jnp.float32)

    # 1) Default path (fast, whole-problem-in-VMEM for this size).
    out = cnn_relu_batchnorm(x, weight, bias, gamma, beta)
    out = jax.block_until_ready(out)
    ref = _reference(x, weight, bias, gamma, beta)
    assert out.shape == (N, COUT, H, W)
    assert jnp.allclose(out, ref, rtol=1e-4, atol=1e-4), \
        float(jnp.max(jnp.abs(out - ref)))

    # 2) Streamed path (lane-folded, 2-way split, row padding + exact correction),
    #    forced on an odd-sized input to validate the general tiling machinery.
    x2 = jax.random.normal(k_x, (N, CIN, 15, 15), dtype=jnp.float32)
    out2 = _forward(x2, weight, bias, gamma, beta, eps=1e-3,
                    num_splits=2, vmem_limit=32 << 20, tile_budget=20 << 20,
                    force_streamed=True)
    out2 = jax.block_until_ready(out2)
    ref2 = _reference(x2, weight, bias, gamma, beta)
    assert out2.shape == (N, COUT, 15, 15)
    assert jnp.allclose(out2, ref2, rtol=1e-4, atol=1e-4), \
        float(jnp.max(jnp.abs(out2 - ref2)))

    print("KERNEL_OK")
</pallas_src>

<mosaic_0001>
module attributes {stable_mosaic.version = 11 : i64} {
  func.func @_fused_small_kernel(%arg0: i32, %arg1: memref<512x16xf32, #tpu.memory_space<vmem>>, %arg2: memref<16x128xf32, #tpu.memory_space<vmem>>, %arg3: memref<1x128xf32, #tpu.memory_space<vmem>>, %arg4: memref<1x128xf32, #tpu.memory_space<vmem>>, %arg5: memref<1x128xf32, #tpu.memory_space<vmem>>, %arg6: memref<512x128xf32, #tpu.memory_space<vmem>>) attributes {dimension_semantics = [#tpu.dimension_semantics<arbitrary>], iteration_bounds = array<i64: 1>, scalar_prefetch = 0 : i64, scratch_operands = 0 : i64, tpu.core_type = #tpu.core_type<tc>, window_params = [{pipeline_mode = #tpu.pipeline_mode<synchronous>, transform_indices = @transform_0, window_bounds = array<i64: 512, 16>}, {pipeline_mode = #tpu.pipeline_mode<synchronous>, transform_indices = @transform_1, window_bounds = array<i64: 16, 128>}, {pipeline_mode = #tpu.pipeline_mode<synchronous>, transform_indices = @transform_2, window_bounds = array<i64: 1, 128>}, {pipeline_mode = #tpu.pipeline_mode<synchronous>, transform_indices = @transform_3, window_bounds = array<i64: 1, 128>}, {pipeline_mode = #tpu.pipeline_mode<synchronous>, transform_indices = @transform_4, window_bounds = array<i64: 1, 128>}, {pipeline_mode = #tpu.pipeline_mode<synchronous>, transform_indices = @transform_5, window_bounds = array<i64: 512, 128>}]} {
    %c0 = arith.constant 0 : index
    %c0_0 = arith.constant 0 : index
    %0 = vector.load %arg1[%c0, %c0_0] : memref<512x16xf32, #tpu.memory_space<vmem>>, vector<512x16xf32>
    %c0_1 = arith.constant 0 : index
    %c0_2 = arith.constant 0 : index
    %1 = vector.load %arg2[%c0_1, %c0_2] : memref<16x128xf32, #tpu.memory_space<vmem>>, vector<16x128xf32>
    %cst = arith.constant dense<0.000000e+00> : vector<512x128xf32>
    %2 = tpu.matmul %0, %1, %cst {dimension_numbers = #tpu.dot_dimension_numbers<[1], [0], [0], [1], [0, 0, 1, 1], [], []>} : vector<512x16xf32>, vector<16x128xf32>, vector<512x128xf32> -> vector<512x128xf32>
    %c0_3 = arith.constant 0 : index
    %c0_4 = arith.constant 0 : index
    %3 = vector.load %arg3[%c0_3, %c0_4] : memref<1x128xf32, #tpu.memory_space<vmem>>, vector<1x128xf32>
    %4 = vector.broadcast %3 : vector<1x128xf32> to vector<512x128xf32>
    %5 = arith.addf %2, %4 : vector<512x128xf32>
    %cst_5 = arith.constant 0.000000e+00 : f32
    %6 = vector.broadcast %cst_5 : f32 to vector<512x128xf32>
    %7 = arith.maximumf %5, %6 : vector<512x128xf32>
    %cst_6 = arith.constant dense<0.000000e+00> : vector<128xf32>
    %8 = vector.multi_reduction <add>, %7, %cst_6 [0] : vector<512x128xf32> to vector<128xf32>
    %9 = vector.shape_cast %8 : vector<128xf32> to vector<1x128xf32>
    %10 = arith.mulf %7, %7 : vector<512x128xf32>
    %cst_7 = arith.constant dense<0.000000e+00> : vector<128xf32>
    %11 = vector.multi_reduction <add>, %10, %cst_7 [0] : vector<512x128xf32> to vector<128xf32>
    %12 = vector.shape_cast %11 : vector<128xf32> to vector<1x128xf32>
    %cst_8 = arith.constant 0.001953125 : f32
    %13 = vector.broadcast %cst_8 : f32 to vector<1x128xf32>
    %14 = arith.mulf %9, %13 : vector<1x128xf32>
    %cst_9 = arith.constant 0.001953125 : f32
    %15 = vector.broadcast %cst_9 : f32 to vector<1x128xf32>
    %16 = arith.mulf %12, %15 : vector<1x128xf32>
    %17 = arith.mulf %14, %14 : vector<1x128xf32>
    %18 = arith.subf %16, %17 : vector<1x128xf32>
    %cst_10 = arith.constant 0.000000e+00 : f32
    %19 = vector.broadcast %cst_10 : f32 to vector<1x128xf32>
    %20 = arith.maximumf %18, %19 : vector<1x128xf32>
    %c0_11 = arith.constant 0 : index
    %c0_12 = arith.constant 0 : index
    %21 = vector.load %arg4[%c0_11, %c0_12] : memref<1x128xf32, #tpu.memory_space<vmem>>, vector<1x128xf32>
    %cst_13 = arith.constant 1.000000e-03 : f32
    %22 = vector.broadcast %cst_13 : f32 to vector<1x128xf32>
    %23 = arith.addf %20, %22 : vector<1x128xf32>
    %24 = math.rsqrt %23 : vector<1x128xf32>
    %25 = arith.mulf %21, %24 : vector<1x128xf32>
    %c0_14 = arith.constant 0 : index
    %c0_15 = arith.constant 0 : index
    %26 = vector.load %arg5[%c0_14, %c0_15] : memref<1x128xf32, #tpu.memory_space<vmem>>, vector<1x128xf32>
    %27 = arith.mulf %14, %25 : vector<1x128xf32>
    %28 = arith.subf %26, %27 : vector<1x128xf32>
    %29 = vector.broadcast %25 : vector<1x128xf32> to vector<512x128xf32>
    %30 = arith.mulf %7, %29 : vector<512x128xf32>
    %31 = vector.broadcast %28 : vector<1x128xf32> to vector<512x128xf32>
    %32 = arith.addf %30, %31 : vector<512x128xf32>
    %c0_16 = arith.constant 0 : index
    %c0_17 = arith.constant 0 : index
    %33 = vector.load %arg6[%c0_16, %c0_17] : memref<512x128xf32, #tpu.memory_space<vmem>>, vector<512x128xf32>
    tpu.vector_store %arg6[%c0_16, %c0_17], %32 {strides = array<i32>} : memref<512x128xf32, #tpu.memory_space<vmem>>, vector<512x128xf32>,
    return
  }
  func.func @transform_0(%arg0: i32) -> (i32, i32) {
    %c0_i32 = arith.constant 0 : i32
    %c0_i32_0 = arith.constant 0 : i32
    %c0_i32_1 = arith.constant 0 : i32
    return %c0_i32, %c0_i32_0 : i32, i32
  }
  func.func @transform_1(%arg0: i32) -> (i32, i32) {
    %c0_i32 = arith.constant 0 : i32
    %c0_i32_0 = arith.constant 0 : i32
    %c0_i32_1 = arith.constant 0 : i32
    return %c0_i32, %c0_i32_0 : i32, i32
  }
  func.func @transform_2(%arg0: i32) -> (i32, i32) {
    %c0_i32 = arith.constant 0 : i32
    %c0_i32_0 = arith.constant 0 : i32
    %c0_i32_1 = arith.constant 0 : i32
    return %c0_i32, %c0_i32_0 : i32, i32
  }
  func.func @transform_3(%arg0: i32) -> (i32, i32) {
    %c0_i32 = arith.constant 0 : i32
    %c0_i32_0 = arith.constant 0 : i32
    %c0_i32_1 = arith.constant 0 : i32
    return %c0_i32, %c0_i32_0 : i32, i32
  }
  func.func @transform_4(%arg0: i32) -> (i32, i32) {
    %c0_i32 = arith.constant 0 : i32
    %c0_i32_0 = arith.constant 0 : i32
    %c0_i32_1 = arith.constant 0 : i32
    return %c0_i32, %c0_i32_0 : i32, i32
  }
  func.func @transform_5(%arg0: i32) -> (i32, i32) {
    %c0_i32 = arith.constant 0 : i32
    %c0_i32_0 = arith.constant 0 : i32
    %c0_i32_1 = arith.constant 0 : i32
    return %c0_i32, %c0_i32_0 : i32, i32
  }
}

</mosaic_0001>

<bundles_post_ra>
// kernel: _forward.1
= control target key start
LH: loop header
LB: loop body
LE: loop exit
PB: predicated region body
PF: predicated region fallthrough
CT: control target
= control target key end

     0   :  { %vm94_vm0 = vcmask 130048   ;;  %s2620_s0 = inlined_call_operand.vmem [shape: f32[512,16], index: 0, kind: input, shape index: {}]   ;;  %s2621_s1 = inlined_call_operand.vmem [shape: f32[16,128], index: 1, kind: input, shape index: {}]   ;;  %s2622_s2 = inlined_call_operand.vmem [shape: f32[1,128], index: 2, kind: input, shape index: {}]   ;;  %s2623_s3 = inlined_call_operand.vmem [shape: f32[1,128], index: 3, kind: input, shape index: {}]   ;;  %s2624_s4 = inlined_call_operand.vmem [shape: f32[1,128], index: 4, kind: input, shape index: {}]   ;;  %s2625_s5 = inlined_call_operand.hbm [shape: f32[512,128], index: 5, kind: output, shape index: {}]  }
   0x1   :  { %v85_v0 = vld [vmem:[%s2621_s1] sm:$0xff]  ;;  %v86_v1 = vld [vmem:[%s2621_s1 + $0x8] sm:$0xff]  ;;  %v23_v5 = vld [vmem:[%s2620_s0 + $0x10] sm:$0xff] }
   0x2   :  { %v21_v2 = vld [vmem:[%s2620_s0] sm:$0xff]  ;;  %v1401_v3 = vpack.c.bf16 %v86_v1, %v85_v0  ;;  %v22_v4 = vld [vmem:[%s2620_s0 + $0x8] sm:$0xff]  ;;  %v24_v6 = vld [vmem:[%s2620_s0 + $0x18] sm:$0xff] }
   0x3   :  { %1305 = vmatprep.mubr.msk.f32.mxu0 %vm94_vm0, %v21_v2  ;;  %v25_v7 = vld [vmem:[%s2620_s0 + $0x20] sm:$0xff]  ;;  %v54_v9 = vld [vmem:[%s2620_s0 + $0x108] sm:$0xff]  ;;  %v55_v11 = vld [vmem:[%s2620_s0 + $0x110] sm:$0xff] }
   0x4   :  { %1402 = vmatprep.subr.bf16.mxu0 %v1401_v3  ;;  %1405 = vmatprep.subr.bf16.mxu1 %v1401_v3  ;;  %v53_v8 = vld [vmem:[%s2620_s0 + $0x100] sm:$0xff]  ;;  %v26_v10 = vld [vmem:[%s2620_s0 + $0x28] sm:$0xff]  ;;  %v27_v12 = vld [vmem:[%s2620_s0 + $0x30] sm:$0xff] }
   0x5   :  { %1404 = vmatpush3.bf16.msra.mxu0 %v1401_v3  ;;  %1406 = vmatpush3.bf16.msra.mxu1 %v1401_v3  ;;  %v56_v13 = vld [vmem:[%s2620_s0 + $0x118] sm:$0xff]  ;;  %v57_v14 = vld [vmem:[%s2620_s0 + $0x120] sm:$0xff]  ;;  %v58_v17 = vld [vmem:[%s2620_s0 + $0x128] sm:$0xff] }
   0x6   :  { %1353 = vmatprep.mubr.msk.f32.mxu1 %vm94_vm0, %v53_v8  ;;  %v28_v15 = vld [vmem:[%s2620_s0 + $0x38] sm:$0xff]  ;;  %v29_v16 = vld [vmem:[%s2620_s0 + $0x40] sm:$0xff]  ;;  %v59_v18 = vld [vmem:[%s2620_s0 + $0x130] sm:$0xff] }
   0x7   :  { %v30_v19 = vld [vmem:[%s2620_s0 + $0x48] sm:$0xff]  ;;  %v31_v20 = vld [vmem:[%s2620_s0 + $0x50] sm:$0xff]  ;;  %v60_v21 = vld [vmem:[%s2620_s0 + $0x138] sm:$0xff] }
   0x8   :  { %1306 = vmatmul.mubr.msk.f32.vlgmr.msra.gmra.mrb[0].mxu0 %vm94_vm0, %v22_v4  ;;  %1354 = vmatmul.mubr.msk.f32.vlgmr.msra.gmra.mrb[0].mxu1 %vm94_vm0, %v54_v9 }
   0x9   :  { %1308 = vmatprep.mubr.msk.f32.mxu0 %vm94_vm0, %v23_v5  ;;  %1356 = vmatprep.mubr.msk.f32.mxu1 %vm94_vm0, %v55_v11 }
   0xc   :  { %1309 = vmatmul.mubr.msk.f32.gmra.mrb[2].mxu0 %vm94_vm0, %v24_v6  ;;  %1357 = vmatmul.mubr.msk.f32.gmra.mrb[2].mxu1 %vm94_vm0, %v56_v13 }
   0xd   :  { %1311 = vmatprep.mubr.msk.f32.mxu0 %vm94_vm0, %v25_v7  ;;  %1359 = vmatprep.mubr.msk.f32.mxu1 %vm94_vm0, %v57_v14 }
  0x10   :  { %1312 = vmatmul.mubr.msk.f32.gmra.mrb[4].mxu0 %vm94_vm0, %v26_v10  ;;  %1360 = vmatmul.mubr.msk.f32.gmra.mrb[4].mxu1 %vm94_vm0, %v58_v17 }
  0x11   :  { %1314 = vmatprep.mubr.msk.f32.mxu0 %vm94_vm0, %v27_v12  ;;  %1362 = vmatprep.mubr.msk.f32.mxu1 %vm94_vm0, %v59_v18 }
  0x14   :  { %1315 = vmatmul.mubr.msk.f32.gmra.mrb[6].mxu0 %vm94_vm0, %v28_v15 }
  0x15   :  { %1317 = vmatprep.mubr.msk.f32.mxu0 %vm94_vm0, %v29_v16 }
  0x16   :  { %10 = vsyncpa [#allocation3], 0  ;;  %v61_v22 = vld [vmem:[%s2620_s0 + $0x140] sm:$0xff]  ;;  %v32_v23 = vld [vmem:[%s2620_s0 + $0x58] sm:$0xff]  ;;  %1363 = vmatmul.mubr.msk.f32.gmra.mrb[6].mxu1 %vm94_vm0, %v60_v21 }
  0x17   :  { %v33_v24 = vld [vmem:[%s2620_s0 + $0x60] sm:$0xff]  ;;  %1365 = vmatprep.mubr.msk.f32.mxu1 %vm94_vm0, %v61_v22  ;;  %v62_v25 = vld [vmem:[%s2620_s0 + $0x148] sm:$0xff]  ;;  %v63_v26 = vld [vmem:[%s2620_s0 + $0x150] sm:$0xff] }
  0x18   :  { %1318 = vmatmul.mubr.msk.f32.gmra.mrb[8].mxu0 %vm94_vm0, %v30_v19  ;;  %v34_v27 = vld [vmem:[%s2620_s0 + $0x68] sm:$0xff]  ;;  %v35_v28 = vld [vmem:[%s2620_s0 + $0x70] sm:$0xff]  ;;  %v64_v29 = vld [vmem:[%s2620_s0 + $0x158] sm:$0xff] }
  0x19   :  { %1320 = vmatprep.mubr.msk.f32.mxu0 %vm94_vm0, %v31_v20  ;;  %v65_v30 = vld [vmem:[%s2620_s0 + $0x160] sm:$0xff]  ;;  %v36_v31 = vld [vmem:[%s2620_s0 + $0x78] sm:$0xff]  ;;  %v66_v33 = vld [vmem:[%s2620_s0 + $0x168] sm:$0xff] }
  0x1a   :  { %1366 = vmatmul.mubr.msk.f32.gmra.mrb[8].mxu1 %vm94_vm0, %v62_v25  ;;  %v37_v32 = vld [vmem:[%s2620_s0 + $0x80] sm:$0xff]  ;;  %v67_v34 = vld [vmem:[%s2620_s0 + $0x170] sm:$0xff]  ;;  %v38_v35 = vld [vmem:[%s2620_s0 + $0x88] sm:$0xff] }
  0x1b   :  { %1368 = vmatprep.mubr.msk.f32.mxu1 %vm94_vm0, %v63_v26  ;;  %v39_v36 = vld [vmem:[%s2620_s0 + $0x90] sm:$0xff]  ;;  %v68_v37 = vld [vmem:[%s2620_s0 + $0x178] sm:$0xff]  ;;  %v69_v38 = vld [vmem:[%s2620_s0 + $0x180] sm:$0xff] }
  0x1c   :  { %1321 = vmatmul.mubr.msk.f32.gmra.mrb[10].mxu0 %vm94_vm0, %v32_v23  ;;  %v40_v39 = vld [vmem:[%s2620_s0 + $0x98] sm:$0xff]  ;;  %v41_v40 = vld [vmem:[%s2620_s0 + $0xa0] sm:$0xff]  ;;  %v70_v41 = vld [vmem:[%s2620_s0 + $0x188] sm:$0xff] }
  0x1d   :  { %1323 = vmatprep.mubr.msk.f32.mxu0 %vm94_vm0, %v33_v24  ;;  %v71_v42 = vld [vmem:[%s2620_s0 + $0x190] sm:$0xff]  ;;  %v42_v43 = vld [vmem:[%s2620_s0 + $0xa8] sm:$0xff]  ;;  %v72_v45 = vld [vmem:[%s2620_s0 + $0x198] sm:$0xff] }
  0x1e   :  { %1369 = vmatmul.mubr.msk.f32.gmra.mrb[10].mxu1 %vm94_vm0, %v64_v29  ;;  %v43_v44 = vld [vmem:[%s2620_s0 + $0xb0] sm:$0xff]  ;;  %v73_v46 = vld [vmem:[%s2620_s0 + $0x1a0] sm:$0xff]  ;;  %v44_v47 = vld [vmem:[%s2620_s0 + $0xb8] sm:$0xff] }
  0x1f   :  { %1371 = vmatprep.mubr.msk.f32.mxu1 %vm94_vm0, %v65_v30  ;;  %v45_v48 = vld [vmem:[%s2620_s0 + $0xc0] sm:$0xff]  ;;  %v74_v49 = vld [vmem:[%s2620_s0 + $0x1a8] sm:$0xff]  ;;  %v75_v50 = vld [vmem:[%s2620_s0 + $0x1b0] sm:$0xff] }
  0x20   :  { %1324 = vmatmul.mubr.msk.f32.gmra.mrb[12].mxu0 %vm94_vm0, %v34_v27  ;;  %v46_v51 = vld [vmem:[%s2620_s0 + $0xc8] sm:$0xff]  ;;  %v47_v52 = vld [vmem:[%s2620_s0 + $0xd0] sm:$0xff]  ;;  %v76_v53 = vld [vmem:[%s2620_s0 + $0x1b8] sm:$0xff] }
  0x21   :  { %1326 = vmatprep.mubr.msk.f32.mxu0 %vm94_vm0, %v35_v28  ;;  %v77_v54 = vld [vmem:[%s2620_s0 + $0x1c0] sm:$0xff]  ;;  %v48_v55 = vld [vmem:[%s2620_s0 + $0xd8] sm:$0xff]  ;;  %v78_v57 = vld [vmem:[%s2620_s0 + $0x1c8] sm:$0xff] }
  0x22   :  { %1372 = vmatmul.mubr.msk.f32.gmra.mrb[12].mxu1 %vm94_vm0, %v66_v33  ;;  %v49_v56 = vld [vmem:[%s2620_s0 + $0xe0] sm:$0xff]  ;;  %v79_v58 = vld [vmem:[%s2620_s0 + $0x1d0] sm:$0xff]  ;;  %v50_v59 = vld [vmem:[%s2620_s0 + $0xe8] sm:$0xff] }
  0x23   :  { %1374 = vmatprep.mubr.msk.f32.mxu1 %vm94_vm0, %v67_v34  ;;  %v51_v60 = vld [vmem:[%s2620_s0 + $0xf0] sm:$0xff]  ;;  %v80_v61 = vld [vmem:[%s2620_s0 + $0x1d8] sm:$0xff]  ;;  %v81_v62 = vld [vmem:[%s2620_s0 + $0x1e0] sm:$0xff] }
  0x24   :  { %1327 = vmatmul.mubr.msk.f32.gmra.mrb[14].mxu0 %vm94_vm0, %v36_v31  ;;  %v52_v63 = vld [vmem:[%s2620_s0 + $0xf8] sm:$0xff]  ;;  %v82_v0 = vld [vmem:[%s2620_s0 + $0x1e8] sm:$0xff]  ;;  %v83_v1 = vld [vmem:[%s2620_s0 + $0x1f0] sm:$0xff] }
  0x25   :  { %1329 = vmatprep.mubr.msk.f32.mxu0 %vm94_vm0, %v37_v32  ;;  %v84_v2 = vld [vmem:[%s2620_s0 + $0x1f8] sm:$0xff]  ;;  %v1734_v3 = vld [vmem:[%s2622_s2] ss:$0 sm:$0xff] }
  0x26   :  { %1375 = vmatmul.mubr.msk.f32.gmra.mrb[14].mxu1 %vm94_vm0, %v68_v37 }
  0x27   :  { %1377 = vmatprep.mubr.msk.f32.mxu1 %vm94_vm0, %v69_v38 }
  0x28   :  { %1330 = vmatmul.mubr.msk.f32.gmra.mrb[16].mxu0 %vm94_vm0, %v38_v35 }
  0x29   :  { %1332 = vmatprep.mubr.msk.f32.mxu0 %vm94_vm0, %v39_v36 }
  0x2a   :  { %1378 = vmatmul.mubr.msk.f32.gmra.mrb[16].mxu1 %vm94_vm0, %v70_v41 }
  0x2b   :  { %1380 = vmatprep.mubr.msk.f32.mxu1 %vm94_vm0, %v71_v42 }
  0x2c   :  { %1333 = vmatmul.mubr.msk.f32.gmra.mrb[18].mxu0 %vm94_vm0, %v40_v39 }
  0x2d   :  { %1335 = vmatprep.mubr.msk.f32.mxu0 %vm94_vm0, %v41_v40 }
  0x2e   :  { %1381 = vmatmul.mubr.msk.f32.gmra.mrb[18].mxu1 %vm94_vm0, %v72_v45 }
  0x2f   :  { %1383 = vmatprep.mubr.msk.f32.mxu1 %vm94_vm0, %v73_v46 }
  0x30   :  { %1336 = vmatmul.mubr.msk.f32.gmra.mrb[20].mxu0 %vm94_vm0, %v42_v43 }
  0x31   :  { %1338 = vmatprep.mubr.msk.f32.mxu0 %vm94_vm0, %v43_v44 }
  0x32   :  { %1384 = vmatmul.mubr.msk.f32.gmra.mrb[20].mxu1 %vm94_vm0, %v74_v49 }
  0x33   :  { %1386 = vmatprep.mubr.msk.f32.mxu1 %vm94_vm0, %v75_v50 }
  0x34   :  { %1339 = vmatmul.mubr.msk.f32.gmra.mrb[22].mxu0 %vm94_vm0, %v44_v47 }
  0x35   :  { %1341 = vmatprep.mubr.msk.f32.mxu0 %vm94_vm0, %v45_v48 }
  0x36   :  { %1387 = vmatmul.mubr.msk.f32.gmra.mrb[22].mxu1 %vm94_vm0, %v76_v53 }
  0x37   :  { %1389 = vmatprep.mubr.msk.f32.mxu1 %vm94_vm0, %v77_v54 }
  0x38   :  { %1342 = vmatmul.mubr.msk.f32.gmra.mrb[24].mxu0 %vm94_vm0, %v46_v51 }
  0x39   :  { %1344 = vmatprep.mubr.msk.f32.mxu0 %vm94_vm0, %v47_v52 }
  0x3a   :  { %1390 = vmatmul.mubr.msk.f32.gmra.mrb[24].mxu1 %vm94_vm0, %v78_v57 }
  0x3b   :  { %1392 = vmatprep.mubr.msk.f32.mxu1 %vm94_vm0, %v79_v58 }
  0x3c   :  { %1345 = vmatmul.mubr.msk.f32.gmra.mrb[26].mxu0 %vm94_vm0, %v48_v55 }
  0x3d   :  { %1347 = vmatprep.mubr.msk.f32.mxu0 %vm94_vm0, %v49_v56 }
  0x3e   :  { %1393 = vmatmul.mubr.msk.f32.gmra.mrb[26].mxu1 %vm94_vm0, %v80_v61 }
  0x3f   :  { %1395 = vmatprep.mubr.msk.f32.mxu1 %vm94_vm0, %v81_v62 }
  0x40   :  { %1348 = vmatmul.mubr.msk.f32.gmra.mrb[28].mxu0 %vm94_vm0, %v50_v59 }
  0x41   :  { %1350 = vmatprep.mubr.msk.f32.mxu0 %vm94_vm0, %v51_v60 }
  0x42   :  { %1396 = vmatmul.mubr.msk.f32.gmra.mrb[28].mxu1 %vm94_vm0, %v82_v0 }
  0x43   :  { %1398 = vmatprep.mubr.msk.f32.mxu1 %vm94_vm0, %v83_v1 }
  0x44   :  { %1351 = vmatmul.mubr.msk.f32.gmra.mrb[30].mxu0 %vm94_vm0, %v52_v63 }
  0x46   :  { %1399 = vmatmul.mubr.msk.f32.gmra.mrb[30].mxu1 %vm94_vm0, %v84_v2 }
  0xdb   :  { %v1307_v4 = vpop.f32.mrb[0].mxu0  ;;  %v1748_v16 = vpop.f32.mrb[0].mxu1 }
  0xdc   :  { %v359_v5 = vadd.f32 %v1307_v4, %v1734_v3  ;;  %v353_v6 = vpop.f32.mrb[1].mxu0  ;;  %v1750_v17 = vpop.f32.mrb[1].mxu1 }
  0xdd   :  { %v354_v7 = vadd.f32 %v1734_v3, %v353_v6 }
  0xde   :  { %v1738_v8 = vmax.f32 %v359_v5, 0.0 }
  0xdf   :  { %v1740_v9 = vmax.f32 %v354_v7, 0.0  ;;  %v1310_v10 = vpop.f32.mrb[2].mxu0  ;;  %v1763_v28 = vpop.f32.mrb[2].mxu1 }
  0xe0   :  { %v369_v11 = vadd.f32 %v1310_v10, %v1734_v3  ;;  %v363_v12 = vpop.f32.mrb[3].mxu0  ;;  %v806_v13 = vmul.f32 %v1738_v8, %v1738_v8  ;;  %v1767_v30 = vpop.f32.mrb[3].mxu1 }
  0xe1   :  { %v805_v14 = vmul.f32 %v1740_v9, %v1740_v9  ;;  %v364_v15 = vadd.f32 %v1734_v3, %v363_v12  ;;  %v736_v18 = vadd.f32 %v1738_v8, %v1740_v9 }
  0xe2   :  { %v1754_v19 = vmax.f32 %v369_v11, 0.0 }
  0xe3   :  { %v1756_v20 = vmax.f32 %v364_v15, 0.0  ;;  %v1313_v21 = vpop.f32.mrb[4].mxu0  ;;  %v869_v24 = vadd.f32 %v806_v13, %v805_v14  ;;  %v1779_v42 = vpop.f32.mrb[4].mxu1 }
  0xe4   :  { %v379_v22 = vadd.f32 %v1313_v21, %v1734_v3  ;;  %v373_v23 = vpop.f32.mrb[5].mxu0  ;;  %v808_v31 = vmul.f32 %v1754_v19, %v1754_v19  ;;  %v1783_v44 = vpop.f32.mrb[5].mxu1 }
  0xe5   :  { %v737_v25 = vadd.f32 %v736_v18, %v1756_v20  ;;  %v807_v26 = vmul.f32 %v1756_v20, %v1756_v20  ;;  %v374_v27 = vadd.f32 %v1734_v3, %v373_v23 }
  0xe6   :  { %v1765_v29 = vmax.f32 %v379_v22, 0.0 }
  0xe7   :  { %v738_v32 = vadd.f32 %v737_v25, %v1754_v19  ;;  %v870_v33 = vadd.f32 %v869_v24, %v807_v26  ;;  %v1772_v34 = vmax.f32 %v374_v27, 0.0  ;;  %v1316_v35 = vpop.f32.mrb[6].mxu0 }
  0xe8   :  { %v389_v36 = vadd.f32 %v1316_v35, %v1734_v3  ;;  %v383_v37 = vpop.f32.mrb[7].mxu0  ;;  %v810_v43 = vmul.f32 %v1765_v29, %v1765_v29 }
  0xe9   :  { %v871_v38 = vadd.f32 %v870_v33, %v808_v31  ;;  %v739_v39 = vadd.f32 %v738_v32, %v1772_v34  ;;  %v809_v40 = vmul.f32 %v1772_v34, %v1772_v34  ;;  %v384_v41 = vadd.f32 %v1734_v3, %v383_v37  ;;  %v1795_v56 = vpop.f32.mrb[6].mxu1 }
  0xea   :  { %v1785_v46 = vmax.f32 %v389_v36, 0.0  ;;  %v1799_v58 = vpop.f32.mrb[7].mxu1 }
  0xeb   :  { %v872_v45 = vadd.f32 %v871_v38, %v809_v40  ;;  %v1787_v47 = vmax.f32 %v384_v41, 0.0  ;;  %v740_v48 = vadd.f32 %v739_v39, %v1765_v29  ;;  %v1319_v49 = vpop.f32.mrb[8].mxu0 }
  0xec   :  { %v399_v50 = vadd.f32 %v1319_v49, %v1734_v3  ;;  %v393_v51 = vpop.f32.mrb[9].mxu0  ;;  %v812_v59 = vmul.f32 %v1785_v46, %v1785_v46 }
  0xed   :  { %v741_v52 = vadd.f32 %v740_v48, %v1787_v47  ;;  %v811_v53 = vmul.f32 %v1787_v47, %v1787_v47  ;;  %v873_v54 = vadd.f32 %v872_v45, %v810_v43  ;;  %v394_v55 = vadd.f32 %v1734_v3, %v393_v51  ;;  %v1811_v7 = vpop.f32.mrb[8].mxu1 }
  0xee   :  { %v1797_v57 = vmax.f32 %v399_v50, 0.0  ;;  %v1815_v11 = vpop.f32.mrb[9].mxu1 }
  0xef   :  { %v874_v60 = vadd.f32 %v873_v54, %v811_v53  ;;  %v1803_v61 = vmax.f32 %v394_v55, 0.0  ;;  %v742_v62 = vadd.f32 %v741_v52, %v1785_v46  ;;  %v1322_v63 = vpop.f32.mrb[10].mxu0 }
  0xf0   :  { %v409_v0 = vadd.f32 %v1322_v63, %v1734_v3  ;;  %v403_v1 = vpop.f32.mrb[11].mxu0  ;;  %v814_v10 = vmul.f32 %v1797_v57, %v1797_v57 }
  0xf1   :  { %v743_v2 = vadd.f32 %v742_v62, %v1803_v61  ;;  %v813_v4 = vmul.f32 %v1803_v61, %v1803_v61  ;;  %v875_v5 = vadd.f32 %v874_v60, %v812_v59  ;;  %v404_v6 = vadd.f32 %v1734_v3, %v403_v1  ;;  %v1827_v27 = vpop.f32.mrb[10].mxu1 }
  0xf2   :  { %v1817_v13 = vmax.f32 %v409_v0, 0.0  ;;  %v1831_v32 = vpop.f32.mrb[11].mxu1 }
  0xf3   :  { %v876_v12 = vadd.f32 %v875_v5, %v813_v4  ;;  %v1819_v14 = vmax.f32 %v404_v6, 0.0  ;;  %v744_v15 = vadd.f32 %v743_v2, %v1797_v57  ;;  %v1325_v18 = vpop.f32.mrb[12].mxu0 }
  0xf4   :  { %v419_v21 = vadd.f32 %v1325_v18, %v1734_v3  ;;  %v413_v22 = vpop.f32.mrb[13].mxu0  ;;  %v816_v33 = vmul.f32 %v1817_v13, %v1817_v13 }
  0xf5   :  { %v745_v23 = vadd.f32 %v744_v15, %v1819_v14  ;;  %v815_v24 = vmul.f32 %v1819_v14, %v1819_v14  ;;  %v877_v25 = vadd.f32 %v876_v12, %v814_v10  ;;  %v414_v26 = vadd.f32 %v1734_v3, %v413_v22  ;;  %v1843_v49 = vpop.f32.mrb[12].mxu1 }
  0xf6   :  { %v1829_v31 = vmax.f32 %v419_v21, 0.0  ;;  %v1847_v51 = vpop.f32.mrb[13].mxu1 }
  0xf7   :  { %v878_v35 = vadd.f32 %v877_v25, %v815_v24  ;;  %v1835_v36 = vmax.f32 %v414_v26, 0.0  ;;  %v746_v37 = vadd.f32 %v745_v23, %v1817_v13  ;;  %v1328_v38 = vpop.f32.mrb[14].mxu0 }
  0xf8   :  { %v429_v39 = vadd.f32 %v1328_v38, %v1734_v3  ;;  %v423_v40 = vpop.f32.mrb[15].mxu0  ;;  %v818_v50 = vmul.f32 %v1829_v31, %v1829_v31 }
  0xf9   :  { %v747_v41 = vadd.f32 %v746_v37, %v1835_v36  ;;  %v817_v43 = vmul.f32 %v1835_v36, %v1835_v36  ;;  %v879_v45 = vadd.f32 %v878_v35, %v816_v33  ;;  %v424_v48 = vadd.f32 %v1734_v3, %v423_v40  ;;  %v1859_v4 = vpop.f32.mrb[14].mxu1 }
  0xfa   :  { %v1849_v53 = vmax.f32 %v429_v39, 0.0  ;;  %v1863_v6 = vpop.f32.mrb[15].mxu1 }
  0xfb   :  { %v880_v52 = vadd.f32 %v879_v45, %v817_v43  ;;  %v1851_v54 = vmax.f32 %v424_v48, 0.0  ;;  %v748_v55 = vadd.f32 %v747_v41, %v1829_v31  ;;  %v1331_v59 = vpop.f32.mrb[16].mxu0 }
  0xfc   :  { %v439_v60 = vadd.f32 %v1331_v59, %v1734_v3  ;;  %v433_v62 = vpop.f32.mrb[17].mxu0  ;;  %v820_v10 = vmul.f32 %v1849_v53, %v1849_v53 }
  0xfd   :  { %v749_v63 = vadd.f32 %v748_v55, %v1851_v54  ;;  %v819_v0 = vmul.f32 %v1851_v54, %v1851_v54  ;;  %v881_v1 = vadd.f32 %v880_v52, %v818_v50  ;;  %v434_v2 = vadd.f32 %v1734_v3, %v433_v62  ;;  %v1875_v35 = vpop.f32.mrb[16].mxu1 }
  0xfe   :  { %v1861_v5 = vmax.f32 %v439_v60, 0.0  ;;  %v1879_v38 = vpop.f32.mrb[17].mxu1 }
  0xff   :  { %v882_v12 = vadd.f32 %v881_v1, %v819_v0  ;;  %v1867_v15 = vmax.f32 %v434_v2, 0.0  ;;  %v750_v18 = vadd.f32 %v749_v63, %v1849_v53  ;;  %v1334_v21 = vpop.f32.mrb[18].mxu0 }
 0x100   :  { %2650 = vst [vmem:[#allocation5_spill] sm:$0xff] %v1861_v5  ;;  %v449_v22 = vadd.f32 %v1334_v21, %v1734_v3  ;;  %v443_v23 = vpop.f32.mrb[19].mxu0  ;;  %v822_v37 = vmul.f32 %v1861_v5, %v1861_v5 }
 0x101   :  { %2651 = vst [vmem:[#allocation6_spill] sm:$0xff] %v1867_v15  ;;  %v751_v24 = vadd.f32 %v750_v18, %v1867_v15  ;;  %v821_v25 = vmul.f32 %v1867_v15, %v1867_v15  ;;  %v883_v26 = vadd.f32 %v882_v12, %v820_v10  ;;  %v444_v33 = vadd.f32 %v1734_v3, %v443_v23  ;;  %v1891_v62 = vpop.f32.mrb[18].mxu1 }
 0x102   :  { %v1881_v40 = vmax.f32 %v449_v22, 0.0  ;;  %v1895_v0 = vpop.f32.mrb[19].mxu1 }
 0x103   :  { %v884_v39 = vadd.f32 %v883_v26, %v821_v25  ;;  %v1883_v41 = vmax.f32 %v444_v33, 0.0  ;;  %v752_v43 = vadd.f32 %v751_v24, %v1861_v5  ;;  %v1337_v45 = vpop.f32.mrb[20].mxu0 }
 0x104   :  { %2652 = vst [vmem:[#allocation7_spill] sm:$0xff] %v1881_v40  ;;  %v459_v48 = vadd.f32 %v1337_v45, %v1734_v3  ;;  %v453_v50 = vpop.f32.mrb[21].mxu0  ;;  %v824_v1 = vmul.f32 %v1881_v40, %v1881_v40 }
 0x105   :  { %2653 = vst [vmem:[#allocation8_spill] sm:$0xff] %v1883_v41  ;;  %v753_v52 = vadd.f32 %v752_v43, %v1883_v41  ;;  %v823_v55 = vmul.f32 %v1883_v41, %v1883_v41  ;;  %v885_v59 = vadd.f32 %v884_v39, %v822_v37  ;;  %v454_v60 = vadd.f32 %v1734_v3, %v453_v50  ;;  %v1907_v33 = vpop.f32.mrb[20].mxu1 }
 0x106   :  { %v1893_v63 = vmax.f32 %v459_v48, 0.0  ;;  %v1911_v39 = vpop.f32.mrb[21].mxu1 }
 0x107   :  { %v886_v2 = vadd.f32 %v885_v59, %v823_v55  ;;  %v1899_v10 = vmax.f32 %v454_v60, 0.0  ;;  %v754_v12 = vadd.f32 %v753_v52, %v1881_v40  ;;  %v1340_v18 = vpop.f32.mrb[22].mxu0 }
 0x108   :  { %2654 = vst [vmem:[#allocation9_spill] sm:$0xff] %v1893_v63  ;;  %v469_v21 = vadd.f32 %v1340_v18, %v1734_v3  ;;  %v463_v22 = vpop.f32.mrb[23].mxu0  ;;  %v826_v37 = vmul.f32 %v1893_v63, %v1893_v63 }
 0x109   :  { %2655 = vst [vmem:[#allocation10_spill] sm:$0xff] %v1899_v10  ;;  %v755_v23 = vadd.f32 %v754_v12, %v1899_v10  ;;  %v825_v24 = vmul.f32 %v1899_v10, %v1899_v10  ;;  %v887_v25 = vadd.f32 %v886_v2, %v824_v1  ;;  %v464_v26 = vadd.f32 %v1734_v3, %v463_v22  ;;  %v1923_v18 = vpop.f32.mrb[22].mxu1 }
 0x10a   :  { %v1913_v45 = vmax.f32 %v469_v21, 0.0  ;;  %v1927_v22 = vpop.f32.mrb[23].mxu1 }
 0x10b   :  { %v888_v43 = vadd.f32 %v887_v25, %v825_v24  ;;  %v1915_v48 = vmax.f32 %v464_v26, 0.0  ;;  %v756_v50 = vadd.f32 %v755_v23, %v1893_v63  ;;  %v1343_v52 = vpop.f32.mrb[24].mxu0 }
 0x10c   :  { %2656 = vst [vmem:[#allocation11_spill] sm:$0xff] %v1913_v45  ;;  %v479_v55 = vadd.f32 %v1343_v52, %v1734_v3  ;;  %v473_v59 = vpop.f32.mrb[25].mxu0  ;;  %v828_v23 = vmul.f32 %v1913_v45, %v1913_v45 }
 0x10d   :  { %2657 = vst [vmem:[#allocation12_spill] sm:$0xff] %v1915_v48  ;;  %v757_v60 = vadd.f32 %v756_v50, %v1915_v48  ;;  %v827_v1 = vmul.f32 %v1915_v48, %v1915_v48  ;;  %v889_v2 = vadd.f32 %v888_v43, %v826_v37  ;;  %v474_v12 = vadd.f32 %v1734_v3, %v473_v59  ;;  %v1939_v63 = vpop.f32.mrb[24].mxu1 }
 0x10e   :  { %v1925_v21 = vmax.f32 %v479_v55, 0.0 }
 0x10f   :  { %v890_v24 = vadd.f32 %v889_v2, %v827_v1  ;;  %v1931_v25 = vmax.f32 %v474_v12, 0.0  ;;  %v758_v26 = vadd.f32 %v757_v60, %v1913_v45  ;;  %v1346_v50 = vpop.f32.mrb[26].mxu0  ;;  %v1943_v2 = vpop.f32.mrb[25].mxu1 }
 0x110   :  { %2658 = vst [vmem:[#allocation13_spill] sm:$0xff] %v1925_v21  ;;  %v489_v52 = vadd.f32 %v1346_v50, %v1734_v3  ;;  %v483_v37 = vpop.f32.mrb[27].mxu0  ;;  %v830_v1 = vmul.f32 %v1925_v21, %v1925_v21 }
 0x111   :  { %2659 = vst [vmem:[#allocation14_spill] sm:$0xff] %v1931_v25  ;;  %v759_v43 = vadd.f32 %v758_v26, %v1931_v25  ;;  %v829_v55 = vmul.f32 %v1931_v25, %v1931_v25  ;;  %v891_v59 = vadd.f32 %v890_v24, %v828_v23  ;;  %v484_v48 = vadd.f32 %v1734_v3, %v483_v37  ;;  %v1955_v41 = vpop.f32.mrb[26].mxu1 }
 0x112   :  { %v1945_v12 = vmax.f32 %v489_v52, 0.0 }
 0x113   :  { %v892_v60 = vadd.f32 %v891_v59, %v829_v55  ;;  %v1947_v50 = vmax.f32 %v484_v48, 0.0  ;;  %v760_v26 = vadd.f32 %v759_v43, %v1925_v21  ;;  %v1349_v45 = vpop.f32.mrb[28].mxu0  ;;  %v514_v48 = vadd.f32 %v1734_v3, %v1750_v17  ;;  %v1961_v43 = vpop.f32.mrb[27].mxu1 }
 0x114   :  { %2660 = vst [vmem:[#allocation15_spill] sm:$0xff] %v1945_v12  ;;  %v499_v25 = vadd.f32 %v1349_v45, %v1734_v3  ;;  %v493_v23 = vpop.f32.mrb[29].mxu0  ;;  %v832_v45 = vmul.f32 %v1945_v12, %v1945_v12 }
 0x115   :  { %2661 = vst [vmem:[#allocation16_spill] sm:$0xff] %v1947_v50  ;;  %v761_v24 = vadd.f32 %v760_v26, %v1947_v50  ;;  %v831_v37 = vmul.f32 %v1947_v50, %v1947_v50  ;;  %v893_v10 = vadd.f32 %v892_v60, %v830_v1  ;;  %v494_v40 = vadd.f32 %v1734_v3, %v493_v23  ;;  %v1973_v5 = vpop.f32.mrb[28].mxu1 }
 0x116   :  { %v1957_v52 = vmax.f32 %v499_v25, 0.0 }
 0x117   :  { %v894_v55 = vadd.f32 %v893_v10, %v831_v37  ;;  %v1965_v59 = vmax.f32 %v494_v40, 0.0  ;;  %v762_v26 = vadd.f32 %v761_v24, %v1945_v12  ;;  %v1352_v1 = vpop.f32.mrb[30].mxu0  ;;  %v519_v10 = vadd.f32 %v1748_v16, %v1734_v3 }
 0x118   :  { %2662 = vst [vmem:[#allocation17_spill] sm:$0xff] %v1957_v52  ;;  %v509_v60 = vadd.f32 %v1352_v1, %v1734_v3  ;;  %v503_v23 = vpop.f32.mrb[31].mxu0  ;;  %v834_v40 = vmul.f32 %v1957_v52, %v1957_v52  ;;  %v1979_v24 = vmax.f32 %v514_v48, 0.0  ;;  %v524_v37 = vadd.f32 %v1734_v3, %v1767_v30 }
 0x119   :  { %2663 = vst [vmem:[#allocation18_spill] sm:$0xff] %v1965_v59  ;;  %v763_v25 = vadd.f32 %v762_v26, %v1965_v59  ;;  %v833_v50 = vmul.f32 %v1965_v59, %v1965_v59  ;;  %v895_v17 = vadd.f32 %v894_v55, %v832_v45  ;;  %v504_v21 = vadd.f32 %v1734_v3, %v503_v23  ;;  %v1983_v26 = vpop.f32.mrb[29].mxu1 }
 0x11a   :  { %2664 = vst [vmem:[#allocation19_spill] sm:$0xff] %v1979_v24  ;;  %v1985_v59 = vmax.f32 %v509_v60, 0.0  ;;  %v1993_v48 = vpop.f32.mrb[30].mxu1  ;;  %v1995_v15 = vmax.f32 %v519_v10, 0.0  ;;  %v837_v30 = vmul.f32 %v1979_v24, %v1979_v24  ;;  %v534_v10 = vadd.f32 %v1734_v3, %v1783_v44 }
 0x11b   :  { %v896_v1 = vadd.f32 %v895_v17, %v833_v50  ;;  %v1987_v45 = vmax.f32 %v504_v21, 0.0  ;;  %v764_v55 = vadd.f32 %v763_v25, %v1957_v52  ;;  %v529_v50 = vadd.f32 %v1763_v28, %v1734_v3  ;;  %v2003_v60 = vpop.f32.mrb[31].mxu1 }
 0x11c   :  { %v2001_v21 = vmax.f32 %v524_v37, 0.0  ;;  %v836_v25 = vmul.f32 %v1985_v59, %v1985_v59  ;;  %v539_v52 = vadd.f32 %v1779_v42, %v1734_v3  ;;  %v544_v44 = vadd.f32 %v1734_v3, %v1799_v58 }
 0x11d   :  { %2665 = vst [vmem:[#allocation20_spill] sm:$0xff] %v1987_v45  ;;  %v765_v23 = vadd.f32 %v764_v55, %v1987_v45  ;;  %v835_v12 = vmul.f32 %v1987_v45, %v1987_v45  ;;  %v897_v16 = vadd.f32 %v896_v1, %v834_v40  ;;  %v838_v45 = vmul.f32 %v1995_v15, %v1995_v15 }
 0x11e   :  { %v2013_v28 = vmax.f32 %v529_v50, 0.0  ;;  %v839_v37 = vmul.f32 %v2001_v21, %v2001_v21  ;;  %v554_v42 = vadd.f32 %v1734_v3, %v1815_v11 }
 0x11f   :  { %v898_v17 = vadd.f32 %v897_v16, %v835_v12  ;;  %v766_v40 = vadd.f32 %v765_v23, %v1985_v59  ;;  %v2020_v16 = vmax.f32 %v534_v10, 0.0 }
 0x120   :  { %v840_v50 = vmul.f32 %v2013_v28, %v2013_v28  ;;  %v2045_v11 = vmax.f32 %v554_v42, 0.0  ;;  %v569_v42 = vadd.f32 %v1827_v27, %v1734_v3  ;;  %v584_v27 = vadd.f32 %v1734_v3, %v1863_v6 }
 0x121   :  { %v767_v1 = vadd.f32 %v766_v40, %v1979_v24  ;;  %v899_v55 = vadd.f32 %v898_v17, %v836_v25  ;;  %v2027_v40 = vmax.f32 %v539_v52, 0.0  ;;  %v549_v24 = vadd.f32 %v1795_v56, %v1734_v3 }
 0x122   :  { %v841_v58 = vmul.f32 %v2020_v16, %v2020_v16  ;;  %v559_v56 = vadd.f32 %v1811_v7, %v1734_v3  ;;  %v845_v7 = vmul.f32 %v2045_v11, %v2045_v11  ;;  %v2087_v6 = vmax.f32 %v584_v27, 0.0 }
 0x123   :  { %v900_v12 = vadd.f32 %v899_v55, %v837_v30  ;;  %v768_v23 = vadd.f32 %v767_v1, %v1995_v15  ;;  %v2036_v1 = vmax.f32 %v544_v44, 0.0  ;;  %v842_v52 = vmul.f32 %v2027_v40, %v2027_v40 }
 0x124   :  { %v599_v27 = vadd.f32 %v1875_v35, %v1734_v3  ;;  %v614_v35 = vadd.f32 %v1734_v3, %v1911_v39 }
 0x125   :  { %v769_v25 = vadd.f32 %v768_v23, %v2001_v21  ;;  %v901_v17 = vadd.f32 %v900_v12, %v838_v45  ;;  %v2041_v12 = vmax.f32 %v549_v24, 0.0  ;;  %v843_v44 = vmul.f32 %v2036_v1, %v2036_v1 }
 0x126   :  { %v2129_v39 = vmax.f32 %v614_v35, 0.0  ;;  %v629_v35 = vadd.f32 %v1923_v18, %v1734_v3  ;;  %v644_v18 = vadd.f32 %v1734_v3, %v1961_v43 }
 0x127   :  { %v902_v30 = vadd.f32 %v901_v17, %v839_v37  ;;  %v770_v10 = vadd.f32 %v769_v25, %v2013_v28  ;;  %v564_v25 = vadd.f32 %v1734_v3, %v1831_v32  ;;  %v844_v24 = vmul.f32 %v2041_v12, %v2041_v12 }
 0x128   :  { %v574_v32 = vadd.f32 %v1734_v3, %v1847_v51  ;;  %v2171_v43 = vmax.f32 %v644_v18, 0.0  ;;  %v659_v18 = vadd.f32 %v1973_v5, %v1734_v3 }
 0x129   :  { %v771_v45 = vadd.f32 %v770_v10, %v2020_v16  ;;  %v903_v55 = vadd.f32 %v902_v30, %v840_v50  ;;  %v2055_v30 = vmax.f32 %v559_v56, 0.0 }
 0x12a   :  { %2670 = vst [vmem:[#allocation25_spill] sm:$0xff] %v2171_v43 }
 0x12b   :  { %v904_v37 = vadd.f32 %v903_v55, %v841_v58  ;;  %v772_v23 = vadd.f32 %v771_v45, %v2027_v40  ;;  %v2062_v45 = vmax.f32 %v564_v25, 0.0  ;;  %v846_v56 = vmul.f32 %v2055_v30, %v2055_v30 }
 0x12d   :  { %v773_v17 = vadd.f32 %v772_v23, %v2036_v1  ;;  %v905_v50 = vadd.f32 %v904_v37, %v842_v52  ;;  %v2069_v37 = vmax.f32 %v569_v42, 0.0  ;;  %v579_v23 = vadd.f32 %v1843_v49, %v1734_v3 }
 0x12e   :  { %v847_v51 = vmul.f32 %v2062_v45, %v2062_v45  ;;  %v589_v49 = vadd.f32 %v1859_v4, %v1734_v3  ;;  %v851_v4 = vmul.f32 %v2087_v6, %v2087_v6 }
 0x12f   :  { %v906_v10 = vadd.f32 %v905_v50, %v843_v44  ;;  %v774_v58 = vadd.f32 %v773_v17, %v2041_v12  ;;  %v2078_v17 = vmax.f32 %v574_v32, 0.0  ;;  %v848_v42 = vmul.f32 %v2069_v37, %v2069_v37 }
 0x131   :  { %v775_v55 = vadd.f32 %v774_v58, %v2045_v11  ;;  %v907_v52 = vadd.f32 %v906_v10, %v844_v24  ;;  %v2083_v10 = vmax.f32 %v579_v23, 0.0  ;;  %v849_v32 = vmul.f32 %v2078_v17, %v2078_v17 }
 0x133   :  { %v908_v44 = vadd.f32 %v907_v52, %v845_v7  ;;  %v776_v25 = vadd.f32 %v775_v55, %v2055_v30  ;;  %v594_v55 = vadd.f32 %v1734_v3, %v1879_v38  ;;  %v850_v23 = vmul.f32 %v2083_v10, %v2083_v10 }
 0x134   :  { %v604_v38 = vadd.f32 %v1734_v3, %v1895_v0 }
 0x135   :  { %v777_v50 = vadd.f32 %v776_v25, %v2062_v45  ;;  %v909_v24 = vadd.f32 %v908_v44, %v846_v56  ;;  %v2097_v44 = vmax.f32 %v589_v49, 0.0 }
 0x137   :  { %v910_v7 = vadd.f32 %v909_v24, %v847_v51  ;;  %v778_v58 = vadd.f32 %v777_v50, %v2069_v37  ;;  %v2104_v50 = vmax.f32 %v594_v55, 0.0  ;;  %v852_v49 = vmul.f32 %v2097_v44, %v2097_v44 }
 0x139   :  { %v779_v52 = vadd.f32 %v778_v58, %v2078_v17  ;;  %v911_v56 = vadd.f32 %v910_v7, %v848_v42  ;;  %v2111_v7 = vmax.f32 %v599_v27, 0.0  ;;  %v609_v58 = vadd.f32 %v1891_v62, %v1734_v3 }
 0x13a   :  { %v853_v0 = vmul.f32 %v2104_v50, %v2104_v50  ;;  %v619_v62 = vadd.f32 %v1907_v33, %v1734_v3  ;;  %v857_v33 = vmul.f32 %v2129_v39, %v2129_v39 }
 0x13b   :  { %v912_v25 = vadd.f32 %v911_v56, %v849_v32  ;;  %v780_v51 = vadd.f32 %v779_v52, %v2083_v10  ;;  %v2120_v52 = vmax.f32 %v604_v38, 0.0  ;;  %v854_v27 = vmul.f32 %v2111_v7, %v2111_v7 }
 0x13d   :  { %v781_v24 = vadd.f32 %v780_v51, %v2087_v6  ;;  %v913_v42 = vadd.f32 %v912_v25, %v850_v23  ;;  %v2125_v25 = vmax.f32 %v609_v58, 0.0  ;;  %v855_v38 = vmul.f32 %v2120_v52, %v2120_v52 }
 0x13f   :  { %v914_v32 = vadd.f32 %v913_v42, %v851_v4  ;;  %v782_v55 = vadd.f32 %v781_v24, %v2097_v44  ;;  %v624_v24 = vadd.f32 %v1734_v3, %v1927_v22  ;;  %v856_v58 = vmul.f32 %v2125_v25, %v2125_v25 }
 0x140   :  { %v634_v22 = vadd.f32 %v1734_v3, %v1943_v2 }
 0x141   :  { %v783_v56 = vadd.f32 %v782_v55, %v2104_v50  ;;  %v915_v23 = vadd.f32 %v914_v32, %v852_v49  ;;  %v2139_v32 = vmax.f32 %v619_v62, 0.0 }
 0x143   :  { %v916_v4 = vadd.f32 %v915_v23, %v853_v0  ;;  %v784_v51 = vadd.f32 %v783_v56, %v2111_v7  ;;  %v2146_v56 = vmax.f32 %v624_v24, 0.0  ;;  %v858_v62 = vmul.f32 %v2139_v32, %v2139_v32 }
 0x145   :  { %v785_v42 = vadd.f32 %v784_v51, %v2120_v52  ;;  %v917_v49 = vadd.f32 %v916_v4, %v854_v27  ;;  %2666 = vst [vmem:[#allocation21_spill] sm:$0xff] %v2146_v56  ;;  %v2153_v4 = vmax.f32 %v629_v35, 0.0  ;;  %v639_v51 = vadd.f32 %v1939_v63, %v1734_v3 }
 0x146   :  { %v859_v2 = vmul.f32 %v2146_v56, %v2146_v56  ;;  %v649_v63 = vadd.f32 %v1955_v41, %v1734_v3  ;;  %v863_v41 = vmul.f32 %v2171_v43, %v2171_v43 }
 0x147   :  { %v918_v55 = vadd.f32 %v917_v49, %v855_v38  ;;  %v786_v0 = vadd.f32 %v785_v42, %v2125_v25  ;;  %2667 = vst [vmem:[#allocation22_spill] sm:$0xff] %v2153_v4  ;;  %v2162_v42 = vmax.f32 %v634_v22, 0.0  ;;  %v860_v35 = vmul.f32 %v2153_v4, %v2153_v4 }
 0x149   :  { %v787_v23 = vadd.f32 %v786_v0, %v2129_v39  ;;  %v919_v27 = vadd.f32 %v918_v55, %v856_v58  ;;  %2668 = vst [vmem:[#allocation23_spill] sm:$0xff] %v2162_v42  ;;  %v2167_v55 = vmax.f32 %v639_v51, 0.0  ;;  %v861_v22 = vmul.f32 %v2162_v42, %v2162_v42 }
 0x14b   :  { %v920_v38 = vadd.f32 %v919_v27, %v857_v33  ;;  %v788_v24 = vadd.f32 %v787_v23, %v2139_v32  ;;  %2669 = vst [vmem:[#allocation24_spill] sm:$0xff] %v2167_v55  ;;  %v654_v23 = vadd.f32 %v1734_v3, %v1983_v26  ;;  %v862_v51 = vmul.f32 %v2167_v55, %v2167_v55 }
 0x14c   :  { %v664_v26 = vadd.f32 %v1734_v3, %v2003_v60 }
 0x14d   :  { %v789_v49 = vadd.f32 %v788_v24, %v2146_v56  ;;  %v921_v58 = vadd.f32 %v920_v38, %v858_v62  ;;  %v2181_v38 = vmax.f32 %v649_v63, 0.0 }
 0x14f   :  { %v922_v33 = vadd.f32 %v921_v58, %v859_v2  ;;  %v790_v0 = vadd.f32 %v789_v49, %v2153_v4  ;;  %2671 = vst [vmem:[#allocation26_spill] sm:$0xff] %v2181_v38  ;;  %v2188_v49 = vmax.f32 %v654_v23, 0.0  ;;  %v864_v63 = vmul.f32 %v2181_v38, %v2181_v38 }
 0x151   :  { %v791_v27 = vadd.f32 %v790_v0, %v2162_v42  ;;  %v923_v62 = vadd.f32 %v922_v33, %v860_v35  ;;  %2672 = vst [vmem:[#allocation27_spill] sm:$0xff] %v2188_v49  ;;  %v2195_v33 = vmax.f32 %v659_v18, 0.0  ;;  %v669_v0 = vadd.f32 %v1993_v48, %v1734_v3 }
 0x152   :  { %v865_v23 = vmul.f32 %v2188_v49, %v2188_v49 }
 0x153   :  { %v924_v24 = vadd.f32 %v923_v62, %v861_v22  ;;  %v792_v2 = vadd.f32 %v791_v27, %v2167_v55  ;;  %2673 = vst [vmem:[#allocation28_spill] sm:$0xff] %v2195_v33  ;;  %v734_v27 = vmax.f32 %v664_v26, 0.0 }
 0x155   :  { %v793_v58 = vadd.f32 %v792_v2, %v2171_v43  ;;  %v925_v35 = vadd.f32 %v924_v24, %v862_v51  ;;  %v866_v51 = vmul.f32 %v2195_v33, %v2195_v33  ;;  %v2205_v2 = vmax.f32 %v669_v0, 0.0 }
 0x156   :  { %v867_v43 = vmul.f32 %v734_v27, %v734_v27 }
 0x157   :  { %v926_v5 = vadd.f32 %v925_v35, %v863_v41  ;;  %v794_v22 = vadd.f32 %v793_v58, %v2181_v38  ;;  %v868_v41 = vmul.f32 %v2205_v2, %v2205_v2 }
 0x159   :  { %v795_v60 = vadd.f32 %v794_v22, %v2188_v49  ;;  %v927_v62 = vadd.f32 %v926_v5, %v864_v63 }
 0x15b   :  { %v928_v24 = vadd.f32 %v927_v62, %v865_v23  ;;  %v796_v18 = vadd.f32 %v795_v60, %v2195_v33 }
 0x15d   :  { %v797_v3 = vadd.f32 %v796_v18, %v734_v27  ;;  %v929_v48 = vadd.f32 %v928_v24, %v866_v51 }
 0x15f   :  { %v798_v58 = vadd.f32 %v797_v3, %v2205_v2  ;;  %v930_v26 = vadd.f32 %v929_v48, %v867_v43  ;;  %v951_v43 = vlaneseq }
 0x161   :  { %v799_v35 = vrot.slane %v798_v58, 4  ;;  %v931_v22 = vadd.f32 %v930_v26, %v868_v41  ;;  %v952_v48 = vshrl.u32 %v951_v43, 7  ;;  %v943_v41 = vld [vmem:[%s2623_s3] sm:$0x1]  ;;  %v2680_v43 = vld [vmem:[#allocation12_spill] sm:$0xff]  ;;  %s1436_s3 = smov [#allocation2]  }
 0x163   :  { %v800_v63 = vadd.f32 %v799_v35, %v798_v58  ;;  %v932_v5 = vrot.slane %v931_v22, 4 }
 0x165   :  { %v801_v49 = vrot.slane %v800_v63, 2  ;;  %v933_v38 = vadd.f32 %v932_v5, %v931_v22 }
 0x167   :  { %v802_v23 = vadd.f32 %v801_v49, %v800_v63  ;;  %v934_v0 = vrot.slane %v933_v38, 2  ;;  %v953_v49 = vsub.s32 0, %v952_v48 }
 0x169   :  { %v803_v62 = vrot.slane %v802_v23, 1  ;;  %v935_v55 = vadd.f32 %v934_v0, %v933_v38 }
 0x16b   :  { %v804_v60 = vadd.f32 %v803_v62, %v802_v23  ;;  %v936_v33 = vrot.slane %v935_v55, 1 }
 0x16d   :  { %v937_v18 = vadd.f32 %v936_v33, %v935_v55  ;;  %v938_v51 = vmul.f32 0.001953125, %v804_v60  ;;  %v947_v55 = vld [vmem:[%s2624_s4] sm:$0x1]  ;;  %v2676_v60 = vld [vmem:[#allocation8_spill] sm:$0xff]  ;;  %s1159_s4 = sshll.u32 %s1436_s3, 4  ;;  %s2597_s4 = int_to_ptr.vmem [resolvable:$true] %s1159_s4 }
 0x16e   :  { %s1412_s24 = scalar_lea.vmem %s2597_s4, 8192  ;;  %p1417_p1 = scmp.lt.s32.totalorder %s2597_s4, %s2597_s4 }
 0x16f   :  { %v939_v24 = vmul.f32 0.001953125, %v937_v18  ;;  %v940_v42 = vmul.f32 %v938_v51, %v938_v51  ;;  %v2677_v18 = vld [vmem:[#allocation7_spill] sm:$0xff]  ;;  %p1413_p0 = scmp.ne.s32.totalorder %s2597_s4, %s1412_s24  ;;  %p1418_p2 = scmp.lt.s32.totalorder %s1412_s24, %s1412_s24 }
 0x171   :  { %v941_v4 = vsub.f32 %v939_v24, %v940_v42  ;;  %v2679_v24 = vld [vmem:[#allocation9_spill] sm:$0xff]  ;;  %p1419_p3 = por %p1418_p2, %p1417_p1 }
 0x173   :  { %v942_v56 = vmax.f32 %v941_v4, 0.0  ;;  %p1420_p4 = pnand %p1419_p3, %p1413_p0 }
 0x175   :  { %v944_v3 = vadd.f32 0.001, %v942_v56 }
 0x177   :  { %1410 = vrsqrt.f32 %v944_v3 }
 0x181   :  { %v1411_v58 = vpop.eup %1410 }
 0x182   :  { %v946_v26 = vmul.f32 %v1411_v58, %v943_v41  ;;  %v2681_v41 = vld [vmem:[#allocation11_spill] sm:$0xff]  ;;  %v2682_v58 = vld [vmem:[#allocation14_spill] sm:$0xff] }
 0x184   :  { %v948_v38 = vmul.f32 %v946_v26, %v938_v51  ;;  %v2217_v33 = vrot.slane %v946_v26, %v953_v49  ;;  %v2678_v51 = vld [vmem:[#allocation10_spill] sm:$0xff] }
 0x186   :  { %v949_v42 = vsub.f32 %v947_v55, %v948_v38  ;;  %v1018_v56 = vmul.f32 %v2217_v33, %v734_v27  ;;  %v2222_v4 = vmul.f32 %v2217_v33, %v1740_v9  ;;  %v2226_v35 = vmul.f32 %v2217_v33, %v1738_v8  ;;  %v2683_v55 = vld [vmem:[#allocation13_spill] sm:$0xff] }
 0x187   :  { %v2230_v22 = vmul.f32 %v2217_v33, %v1756_v20  ;;  %v2234_v63 = vmul.f32 %v2217_v33, %v1754_v19  ;;  %v2238_v5 = vmul.f32 %v2217_v33, %v1772_v34  ;;  %v2242_v9 = vmul.f32 %v2217_v33, %v1765_v29 }
 0x188   :  { %v2244_v27 = vrot.slane %v949_v42, %v953_v49  ;;  %v2248_v8 = vmul.f32 %v2217_v33, %v1787_v47  ;;  %v2252_v20 = vmul.f32 %v2217_v33, %v1785_v46  ;;  %v2256_v19 = vmul.f32 %v2217_v33, %v1803_v61  ;;  %v2684_v42 = vld [vmem:[#allocation16_spill] sm:$0xff] }
 0x189   :  { %v2260_v34 = vmul.f32 %v2217_v33, %v1797_v57  ;;  %v2264_v29 = vmul.f32 %v2217_v33, %v1819_v14  ;;  %v2268_v47 = vmul.f32 %v2217_v33, %v1817_v13  ;;  %v2272_v46 = vmul.f32 %v2217_v33, %v1835_v36  ;;  %v2674_v13 = vld [vmem:[#allocation6_spill] sm:$0xff]  ;;  %v2675_v36 = vld [vmem:[#allocation5_spill] sm:$0xff] }
 0x18a   :  { %v1088_v23 = vadd.f32 %v2244_v27, %v1018_v56  ;;  %v2277_v61 = vmul.f32 %v2217_v33, %v1829_v31  ;;  %v2281_v57 = vmul.f32 %v2217_v33, %v1851_v54  ;;  %v2285_v14 = vmul.f32 %v2217_v33, %v1849_v53 }
 0x18b   :  { %v2289_v0 = vmul.f32 %v2217_v33, %v2674_v13  ;;  %v2293_v62 = vmul.f32 %v2217_v33, %v2675_v36  ;;  %v2297_v31 = vmul.f32 %v2217_v33, %v2676_v60  ;;  %v2301_v54 = vmul.f32 %v2217_v33, %v2677_v18  ;;  %v2686_v36 = vld [vmem:[#allocation18_spill] sm:$0xff]  ;;  %v2687_v18 = vld [vmem:[#allocation17_spill] sm:$0xff] }
 0x18c   :  { %1152 = vst [vmem:[#allocation2 + $0x1f0] sm:$0xff] %v1088_v23  ;;  %v2305_v53 = vmul.f32 %v2217_v33, %v2678_v51  ;;  %v2309_v3 = vmul.f32 %v2217_v33, %v2679_v24  ;;  %v2313_v48 = vmul.f32 %v2217_v33, %v2680_v43  ;;  %v2317_v49 = vmul.f32 %v2217_v33, %v2681_v41  ;;  %v2685_v23 = vld [vmem:[#allocation15_spill] sm:$0xff]  ;;  %v2688_v24 = vld [vmem:[#allocation20_spill] sm:$0xff] }
 0x18d   :  { %v2321_v26 = vmul.f32 %v2217_v33, %v2682_v58  ;;  %v2325_v38 = vmul.f32 %v2217_v33, %v2683_v55  ;;  %v2329_v56 = vmul.f32 %v2217_v33, %v2684_v42  ;;  %v2333_v13 = vmul.f32 %v2217_v33, %v2685_v23  ;;  %v2689_v58 = vld [vmem:[#allocation19_spill] sm:$0xff] }
 0x18e   :  { %v2337_v60 = vmul.f32 %v2217_v33, %v2686_v36  ;;  %v2341_v51 = vmul.f32 %v2217_v33, %v2687_v18  ;;  %v2345_v43 = vmul.f32 %v2217_v33, %v2688_v24  ;;  %v2349_v41 = vmul.f32 %v2217_v33, %v1985_v59  ;;  %v2694_v24 = vld [vmem:[#allocation21_spill] sm:$0xff] }
 0x18f   :  { %v2353_v55 = vmul.f32 %v2217_v33, %v2689_v58  ;;  %v2357_v42 = vmul.f32 %v2217_v33, %v1995_v15  ;;  %v2361_v23 = vmul.f32 %v2217_v33, %v2001_v21  ;;  %v2365_v36 = vmul.f32 %v2217_v33, %v2013_v28  ;;  %v2696_v58 = vld [vmem:[#allocation22_spill] sm:$0xff] }
 0x190   :  { %v2369_v59 = vmul.f32 %v2217_v33, %v2020_v16  ;;  %v2373_v18 = vmul.f32 %v2217_v33, %v2027_v40  ;;  %v2377_v15 = vmul.f32 %v2217_v33, %v2036_v1  ;;  %v2381_v21 = vmul.f32 %v2217_v33, %v2041_v12 }
 0x191   :  { %v2385_v28 = vmul.f32 %v2217_v33, %v2045_v11  ;;  %v2389_v16 = vmul.f32 %v2217_v33, %v2055_v30  ;;  %v2393_v40 = vmul.f32 %v2217_v33, %v2062_v45  ;;  %v2397_v1 = vmul.f32 %v2217_v33, %v2069_v37 }
 0x192   :  { %v2401_v12 = vmul.f32 %v2217_v33, %v2078_v17  ;;  %v2405_v11 = vmul.f32 %v2217_v33, %v2083_v10  ;;  %v2409_v30 = vmul.f32 %v2217_v33, %v2087_v6  ;;  %v2413_v45 = vmul.f32 %v2217_v33, %v2097_v44 }
 0x193   :  { %v2417_v37 = vmul.f32 %v2217_v33, %v2104_v50  ;;  %v2421_v17 = vmul.f32 %v2217_v33, %v2111_v7  ;;  %v2425_v10 = vmul.f32 %v2217_v33, %v2120_v52  ;;  %v2429_v6 = vmul.f32 %v2217_v33, %v2125_v25 }
 0x194   :  { %v2433_v44 = vmul.f32 %v2217_v33, %v2129_v39  ;;  %v2437_v50 = vmul.f32 %v2217_v33, %v2139_v32  ;;  %v2441_v7 = vmul.f32 %v2217_v33, %v2694_v24  ;;  %v2445_v52 = vmul.f32 %v2217_v33, %v2696_v58 }
 0x195   :  { %2690 = vst [vmem:[#allocation6_spill] sm:$0xff] %v2425_v10  ;;  %2691 = vst [vmem:[#allocation5_spill] sm:$0xff] %v2429_v6  ;;  %v2698_v10 = vld [vmem:[#allocation23_spill] sm:$0xff]  ;;  %v2699_v6 = vld [vmem:[#allocation24_spill] sm:$0xff] }
 0x196   :  { %2692 = vst [vmem:[#allocation8_spill] sm:$0xff] %v2433_v44  ;;  %2693 = vst [vmem:[#allocation7_spill] sm:$0xff] %v2437_v50  ;;  %v2449_v25 = vmul.f32 %v2217_v33, %v2698_v10  ;;  %v2453_v39 = vmul.f32 %v2217_v33, %v2699_v6  ;;  %v2700_v44 = vld [vmem:[#allocation25_spill] sm:$0xff]  ;;  %v2702_v50 = vld [vmem:[#allocation26_spill] sm:$0xff]  ;;  %v2473_v6 = vmul.f32 %v2217_v33, %v2205_v2 }
 0x197   :  { %2695 = vst [vmem:[#allocation10_spill] sm:$0xff] %v2441_v7  ;;  %2697 = vst [vmem:[#allocation9_spill] sm:$0xff] %v2445_v52  ;;  %v2457_v32 = vmul.f32 %v2217_v33, %v2700_v44  ;;  %v2461_v24 = vmul.f32 %v2217_v33, %v2702_v50  ;;  %v2703_v7 = vld [vmem:[#allocation27_spill] sm:$0xff]  ;;  %v2704_v52 = vld [vmem:[#allocation28_spill] sm:$0xff]  ;;  %v1026_v44 = vadd.f32 %v2244_v27, %v2222_v4 }
 0x198   :  { %v2465_v58 = vmul.f32 %v2217_v33, %v2703_v7  ;;  %v2469_v10 = vmul.f32 %v2217_v33, %v2704_v52  ;;  %v1028_v50 = vadd.f32 %v2244_v27, %v2230_v22  ;;  %v1029_v7 = vadd.f32 %v2244_v27, %v2234_v63 }
 0x199   :  { %2701 = vst [vmem:[#allocation12_spill] sm:$0xff] %v2457_v32  ;;  %v1027_v32 = vadd.f32 %v2244_v27, %v2226_v35  ;;  %v1030_v52 = vadd.f32 %v2244_v27, %v2238_v5  ;;  %v1032_v2 = vadd.f32 %v2244_v27, %v2248_v8  ;;  %v1033_v33 = vadd.f32 %v2244_v27, %v2252_v20 }
 0x19a   :  { %2705 = vst [vmem:[#allocation11_spill] sm:$0xff] %v2469_v10  ;;  %v1031_v10 = vadd.f32 %v2244_v27, %v2242_v9  ;;  %v1034_v4 = vadd.f32 %v2244_v27, %v2256_v19  ;;  %1090 = vst [vmem:[#allocation2] sm:$0xff] %v1026_v44  ;;  %v1035_v35 = vadd.f32 %v2244_v27, %v2260_v34 }
 0x19b   :  { %v1036_v22 = vadd.f32 %v2244_v27, %v2264_v29  ;;  %v1037_v63 = vadd.f32 %v2244_v27, %v2268_v47  ;;  %v1038_v5 = vadd.f32 %v2244_v27, %v2272_v46  ;;  %1091 = vst [vmem:[#allocation2 + $0x8] sm:$0xff] %v1027_v32  ;;  %1092 = vst [vmem:[#allocation2 + $0x10] sm:$0xff] %v1028_v50 }
 0x19c   :  { %1093 = vst [vmem:[#allocation2 + $0x18] sm:$0xff] %v1029_v7  ;;  %1094 = vst [vmem:[#allocation2 + $0x20] sm:$0xff] %v1030_v52  ;;  %v1039_v9 = vadd.f32 %v2244_v27, %v2277_v61  ;;  %v1040_v8 = vadd.f32 %v2244_v27, %v2281_v57  ;;  %v1041_v20 = vadd.f32 %v2244_v27, %v2285_v14 }
 0x19d   :  { %v1042_v19 = vadd.f32 %v2244_v27, %v2289_v0  ;;  %1095 = vst [vmem:[#allocation2 + $0x28] sm:$0xff] %v1031_v10  ;;  %1096 = vst [vmem:[#allocation2 + $0x30] sm:$0xff] %v1032_v2  ;;  %v1043_v34 = vadd.f32 %v2244_v27, %v2293_v62  ;;  %v1044_v29 = vadd.f32 %v2244_v27, %v2297_v31 }
 0x19e   :  { %1097 = vst [vmem:[#allocation2 + $0x38] sm:$0xff] %v1033_v33  ;;  %1098 = vst [vmem:[#allocation2 + $0x40] sm:$0xff] %v1034_v4  ;;  %v1045_v47 = vadd.f32 %v2244_v27, %v2301_v54  ;;  %v1046_v46 = vadd.f32 %v2244_v27, %v2305_v53  ;;  %v1047_v61 = vadd.f32 %v2244_v27, %v2309_v3  ;;  %v2710_v10 = vld [vmem:[#allocation10_spill] sm:$0xff] }
 0x19f   :  { %1099 = vst [vmem:[#allocation2 + $0x48] sm:$0xff] %v1035_v35  ;;  %1100 = vst [vmem:[#allocation2 + $0x50] sm:$0xff] %v1036_v22  ;;  %v1048_v57 = vadd.f32 %v2244_v27, %v2313_v48  ;;  %v1049_v14 = vadd.f32 %v2244_v27, %v2317_v49  ;;  %v1050_v0 = vadd.f32 %v2244_v27, %v2321_v26 }
 0x1a0   :  { %1101 = vst [vmem:[#allocation2 + $0x58] sm:$0xff] %v1037_v63  ;;  %1102 = vst [vmem:[#allocation2 + $0x60] sm:$0xff] %v1038_v5  ;;  %v1051_v62 = vadd.f32 %v2244_v27, %v2325_v38  ;;  %v1052_v31 = vadd.f32 %v2244_v27, %v2329_v56  ;;  %v1053_v54 = vadd.f32 %v2244_v27, %v2333_v13  ;;  %v2712_v2 = vld [vmem:[#allocation12_spill] sm:$0xff] }
 0x1a1   :  { %1103 = vst [vmem:[#allocation2 + $0x68] sm:$0xff] %v1039_v9  ;;  %1104 = vst [vmem:[#allocation2 + $0x70] sm:$0xff] %v1040_v8  ;;  %v1054_v53 = vadd.f32 %v2244_v27, %v2337_v60  ;;  %v1055_v3 = vadd.f32 %v2244_v27, %v2341_v51  ;;  %v1056_v48 = vadd.f32 %v2244_v27, %v2345_v43 }
 0x1a2   :  { %1105 = vst [vmem:[#allocation2 + $0x78] sm:$0xff] %v1041_v20  ;;  %1106 = vst [vmem:[#allocation2 + $0x80] sm:$0xff] %v1042_v19  ;;  %v1057_v49 = vadd.f32 %v2244_v27, %v2349_v41  ;;  %v1058_v26 = vadd.f32 %v2244_v27, %v2353_v55  ;;  %v1059_v38 = vadd.f32 %v2244_v27, %v2357_v42 }
 0x1a3   :  { %1107 = vst [vmem:[#allocation2 + $0x88] sm:$0xff] %v1043_v34  ;;  %1108 = vst [vmem:[#allocation2 + $0x90] sm:$0xff] %v1044_v29  ;;  %v1060_v56 = vadd.f32 %v2244_v27, %v2361_v23  ;;  %v1061_v13 = vadd.f32 %v2244_v27, %v2365_v36  ;;  %v1062_v60 = vadd.f32 %v2244_v27, %v2369_v59 }
 0x1a4   :  { %1109 = vst [vmem:[#allocation2 + $0x98] sm:$0xff] %v1045_v47  ;;  %1110 = vst [vmem:[#allocation2 + $0xa0] sm:$0xff] %v1046_v46  ;;  %v1063_v51 = vadd.f32 %v2244_v27, %v2373_v18  ;;  %v1064_v43 = vadd.f32 %v2244_v27, %v2377_v15  ;;  %v1065_v41 = vadd.f32 %v2244_v27, %v2381_v21 }
 0x1a5   :  { %1111 = vst [vmem:[#allocation2 + $0xa8] sm:$0xff] %v1047_v61  ;;  %1112 = vst [vmem:[#allocation2 + $0xb0] sm:$0xff] %v1048_v57  ;;  %v1066_v55 = vadd.f32 %v2244_v27, %v2385_v28  ;;  %v1067_v42 = vadd.f32 %v2244_v27, %v2389_v16  ;;  %v1068_v23 = vadd.f32 %v2244_v27, %v2393_v40  ;;  %v2706_v40 = vld [vmem:[#allocation6_spill] sm:$0xff] }
 0x1a6   :  { %1113 = vst [vmem:[#allocation2 + $0xb8] sm:$0xff] %v1049_v14  ;;  %1114 = vst [vmem:[#allocation2 + $0xc0] sm:$0xff] %v1050_v0  ;;  %v1069_v36 = vadd.f32 %v2244_v27, %v2397_v1  ;;  %v1070_v59 = vadd.f32 %v2244_v27, %v2401_v12  ;;  %v1071_v18 = vadd.f32 %v2244_v27, %v2405_v11  ;;  %v2707_v12 = vld [vmem:[#allocation5_spill] sm:$0xff] }
 0x1a7   :  { %1115 = vst [vmem:[#allocation2 + $0xc8] sm:$0xff] %v1051_v62  ;;  %1116 = vst [vmem:[#allocation2 + $0xd0] sm:$0xff] %v1052_v31  ;;  %v1072_v15 = vadd.f32 %v2244_v27, %v2409_v30  ;;  %v1073_v21 = vadd.f32 %v2244_v27, %v2413_v45  ;;  %v1074_v28 = vadd.f32 %v2244_v27, %v2417_v37  ;;  %v2708_v30 = vld [vmem:[#allocation8_spill] sm:$0xff]  ;;  %v2709_v37 = vld [vmem:[#allocation7_spill] sm:$0xff] }
 0x1a8   :  { %1117 = vst [vmem:[#allocation2 + $0xd8] sm:$0xff] %v1053_v54  ;;  %1118 = vst [vmem:[#allocation2 + $0xe0] sm:$0xff] %v1054_v53  ;;  %v1075_v16 = vadd.f32 %v2244_v27, %v2421_v17  ;;  %v1076_v1 = vadd.f32 %v2244_v27, %v2706_v40  ;;  %v1077_v11 = vadd.f32 %v2244_v27, %v2707_v12  ;;  %v2711_v17 = vld [vmem:[#allocation9_spill] sm:$0xff] }
 0x1a9   :  { %1119 = vst [vmem:[#allocation2 + $0xe8] sm:$0xff] %v1055_v3  ;;  %1120 = vst [vmem:[#allocation2 + $0xf0] sm:$0xff] %v1056_v48  ;;  %v1078_v45 = vadd.f32 %v2244_v27, %v2708_v30  ;;  %v1079_v32 = vadd.f32 %v2244_v27, %v2709_v37  ;;  %v1080_v44 = vadd.f32 %v2244_v27, %v2710_v10 }
 0x1aa   :  { %1121 = vst [vmem:[#allocation2 + $0xf8] sm:$0xff] %v1057_v49  ;;  %1122 = vst [vmem:[#allocation2 + $0x100] sm:$0xff] %v1058_v26  ;;  %v1081_v50 = vadd.f32 %v2244_v27, %v2711_v17  ;;  %v1082_v7 = vadd.f32 %v2244_v27, %v2449_v25  ;;  %v1083_v52 = vadd.f32 %v2244_v27, %v2453_v39  ;;  %v2713_v25 = vld [vmem:[#allocation11_spill] sm:$0xff] }
 0x1ab   :  { %1123 = vst [vmem:[#allocation2 + $0x108] sm:$0xff] %v1059_v38  ;;  %1124 = vst [vmem:[#allocation2 + $0x110] sm:$0xff] %v1060_v56  ;;  %v1084_v33 = vadd.f32 %v2244_v27, %v2712_v2  ;;  %v1085_v4 = vadd.f32 %v2244_v27, %v2461_v24  ;;  %v1086_v35 = vadd.f32 %v2244_v27, %v2465_v58 }
 0x1ac   :  { %1125 = vst [vmem:[#allocation2 + $0x118] sm:$0xff] %v1061_v13  ;;  %1126 = vst [vmem:[#allocation2 + $0x120] sm:$0xff] %v1062_v60  ;;  %v1087_v39 = vadd.f32 %v2244_v27, %v2713_v25  ;;  %v1089_v22 = vadd.f32 %v2244_v27, %v2473_v6 }
 0x1ad   :  { %1127 = vst [vmem:[#allocation2 + $0x128] sm:$0xff] %v1063_v51  ;;  %1128 = vst [vmem:[#allocation2 + $0x130] sm:$0xff] %v1064_v43 }
 0x1ae   :  { %1129 = vst [vmem:[#allocation2 + $0x138] sm:$0xff] %v1065_v41  ;;  %1130 = vst [vmem:[#allocation2 + $0x140] sm:$0xff] %v1066_v55 }
 0x1af   :  { %1131 = vst [vmem:[#allocation2 + $0x148] sm:$0xff] %v1067_v42  ;;  %1132 = vst [vmem:[#allocation2 + $0x150] sm:$0xff] %v1068_v23 }
 0x1b0   :  { %1133 = vst [vmem:[#allocation2 + $0x158] sm:$0xff] %v1069_v36  ;;  %1134 = vst [vmem:[#allocation2 + $0x160] sm:$0xff] %v1070_v59 }
 0x1b1   :  { %1135 = vst [vmem:[#allocation2 + $0x168] sm:$0xff] %v1071_v18  ;;  %1136 = vst [vmem:[#allocation2 + $0x170] sm:$0xff] %v1072_v15 }
 0x1b2   :  { %1137 = vst [vmem:[#allocation2 + $0x178] sm:$0xff] %v1073_v21  ;;  %1138 = vst [vmem:[#allocation2 + $0x180] sm:$0xff] %v1074_v28 }
 0x1b3   :  { %1139 = vst [vmem:[#allocation2 + $0x188] sm:$0xff] %v1075_v16  ;;  %1140 = vst [vmem:[#allocation2 + $0x190] sm:$0xff] %v1076_v1 }
 0x1b4   :  { %1141 = vst [vmem:[#allocation2 + $0x198] sm:$0xff] %v1077_v11  ;;  %1142 = vst [vmem:[#allocation2 + $0x1a0] sm:$0xff] %v1078_v45 }
 0x1b5   :  { %1143 = vst [vmem:[#allocation2 + $0x1a8] sm:$0xff] %v1079_v32  ;;  %1144 = vst [vmem:[#allocation2 + $0x1b0] sm:$0xff] %v1080_v44 }
 0x1b6   :  { %1145 = vst [vmem:[#allocation2 + $0x1b8] sm:$0xff] %v1081_v50  ;;  %1146 = vst [vmem:[#allocation2 + $0x1c0] sm:$0xff] %v1082_v7 }
 0x1b7   :  { %1147 = vst [vmem:[#allocation2 + $0x1c8] sm:$0xff] %v1083_v52  ;;  %1148 = vst [vmem:[#allocation2 + $0x1d0] sm:$0xff] %v1084_v33 }
 0x1b8   :  { %1149 = vst [vmem:[#allocation2 + $0x1d8] sm:$0xff] %v1085_v4  ;;  %1150 = vst [vmem:[#allocation2 + $0x1e0] sm:$0xff] %v1086_v35 }
 0x1b9   :  { %1151 = vst [vmem:[#allocation2 + $0x1e8] sm:$0xff] %v1087_v39  ;;  %1153 = vst [vmem:[#allocation2 + $0x1f8] sm:$0xff] %v1089_v22 }
 0x1ba   :  { %1423 = shalt.err (!%p1420_p4)
}
 0x1bb   :  { %s1424_s27 = scalar_lea.hbm %s2625_s5, 8192 }
 0x1bc   :  { %p1425_p5 = scmp.ne.s32.totalorder %s2625_s5, %s1424_s27  ;;  %p1428_p6 = scmp.lt.u32.totalorder %s1424_s27, %s2625_s5 }
 0x1be   :  { %p1430_p7 = pnand %p1428_p6, %p1425_p5 }
 0x1c0   :  { %1433 = shalt.err (!%p1430_p7)
}
 0x1c1   :  { %s1437_s6 = smov 128   ;;  %s1438_s7 = smov 8  }
 0x1c2   :  { %1165 = dma.vmem_to_hbm [thread:$0]  %s2597_s4, 8192, %s2625_s5, [#allocation3], %s1437_s6, %s1437_s6, %s1438_s7  }
 0x1c3   :  { %1434 = dma.done.wait [#allocation3], 8192  }
 0x1c4   :  { %1435 = vsyncadd [#allocation3], 4294959104 }
 0x1c5   :  { %1169 = vsyncpa [#allocation3], 1 }

</bundles_post_ra>
